<compile_context>
chip_gen: v6e
topology: v6e:2x2x1
jax: 0.10.0
libtpu: 0.0.40
codegen_flags: <defaults>
</compile_context>

<pallas_src>
import functools

import jax
import jax.numpy as jnp
import numpy as np
from jax import lax
from jax.experimental import pallas as pl
from jax.experimental.pallas import tpu as pltpu

_BF = 4  # f32 bytes


def _vmem_budget_bytes():
    """Generation-aware usable-VMEM budget (~75% of physical, clamped 32..100 MiB)."""
    phys = 64 * 1024 * 1024  # conservative fallback (v7x per-core physical)
    try:
        info = pltpu.get_tpu_info()
        phys = int(getattr(info, "vmem_capacity_bytes", phys) or phys)
    except Exception:
        pass
    return int(min(max(32 * 1024 * 1024, (phys * 3) // 4), 100 * 1024 * 1024))


def _pick_hw_tile(hw, c, *, target_bytes, max_bytes, elem_bytes=4):
    """Largest 128-aligned HW tile whose (C, tile) slab is <= min(target, max).

    Prefers an exact divisor of HW (avoids remainder masking); a full-extent
    tile (== HW) is always legal regardless of lane alignment."""
    per_col = max(1, c * elem_bytes)
    cap_cols = max(128, int(min(target_bytes, max_bytes)) // per_col)
    if hw <= cap_cols:
        return hw
    t = max(128, (cap_cols // 128) * 128)
    d, tried = t, 0
    while d >= 128 and tried < 64:  # prefer a 128-aligned exact divisor
        if hw % d == 0:
            return d
        d -= 128
        tried += 1
    return t


def _coef_column(w3, b_col, imp_cn, gram, num_imp):
    """coef[c] = sum_n imp[c, n] * p[n],  p = normalize(<w3, gram> + b).

    Shapes: w3 (num_imp, C, C), b_col (num_imp, 1), imp_cn (C, num_imp),
    gram (C, C) f32.  VPU/XLU only (lane + sublane reduces); the only layout
    move is the tiny (num_imp, 1) -> (1, num_imp) flip, done with an
    elementwise diagonal trick so no odd-shaped XLU transpose is emitted.
    # TODO(synk): for very large C, replace the (num_imp, C, C) broadcast
    # product with a flattened (1, C*C) x (num_imp, C*C) dot to free VMEM.
    """
    s2 = jnp.sum(w3 * gram[None, :, :], axis=2)              # (num_imp, C)   lane reduce
    q = jnp.sum(s2, axis=1, keepdims=True) + b_col           # (num_imp, 1)   lane reduce
    p = q / (jnp.sum(q, axis=0, keepdims=True) + 1e-12)      # (num_imp, 1)   sublane reduce
    eye = (lax.broadcasted_iota(jnp.int32, (num_imp, num_imp), 0)
           == lax.broadcasted_iota(jnp.int32, (num_imp, num_imp), 1))
    p_row = jnp.sum(jnp.where(eye, p, 0.0), axis=0, keepdims=True)   # (1, num_imp)
    return jnp.sum(imp_cn * p_row, axis=1, keepdims=True)            # (C, 1)


# ---------------------------------------------------------------------------
# Fused single-pass kernel: whole (C, HW) slab resident, gram + apply in one go.
# ---------------------------------------------------------------------------
def _fused_kernel(x_ref, wm_ref, bm_ref, impm_ref, wa_ref, ba_ref, impa_ref,
                  o_ref, *, inv_hw, num_imp):
    X = x_ref[0].astype(jnp.float32)                          # (C, HW)
    gram = lax.dot_general(
        X, X, dimension_numbers=(((1,), (1,)), ((), ())),
        preferred_element_type=jnp.float32) * inv_hw          # (C, C)
    scale = _coef_column(wm_ref[...], bm_ref[...], impm_ref[...], gram, num_imp)
    shift = _coef_column(wa_ref[...], ba_ref[...], impa_ref[...], gram, num_imp)
    o_ref[0] = (scale * X + shift).astype(o_ref.dtype)


# ---------------------------------------------------------------------------
# Two-pass fallback: pass 1 accumulates gram over HW tiles and emits (C, 1)
# coefficient columns; pass 2 is a pure streaming apply.
# ---------------------------------------------------------------------------
def _gram_coef_kernel(x_ref, wm_ref, bm_ref, impm_ref, wa_ref, ba_ref, impa_ref,
                      scale_ref, shift_ref, gram_acc, *, inv_hw, hw, thw, num_imp):
    t = pl.program_id(1)
    last = pl.num_programs(1) - 1

    @pl.when(t == 0)
    def _init():
        gram_acc[...] = jnp.zeros_like(gram_acc)

    def accumulate(X):
        gram_acc[...] += lax.dot_general(
            X, X, dimension_numbers=(((1,), (1,)), ((), ())),
            preferred_element_type=jnp.float32)

    X = x_ref[0].astype(jnp.float32)                          # (C, thw)

    if hw % thw == 0:
        accumulate(X)
    else:
        # Remainder masking only on the final (partial) tile.
        @pl.when(t != last)
        def _full():
            accumulate(X)

        @pl.when(t == last)
        def _edge():
            rem = hw - t * thw
            col = lax.broadcasted_iota(jnp.int32, X.shape, 1)
            accumulate(jnp.where(col < rem, X, 0.0))

    @pl.when(t == last)
    def _finalize():
        gram = gram_acc[...] * inv_hw                         # (C, C)
        scale_ref[0] = _coef_column(
            wm_ref[...], bm_ref[...], impm_ref[...], gram, num_imp
        ).astype(scale_ref.dtype)
        shift_ref[0] = _coef_column(
            wa_ref[...], ba_ref[...], impa_ref[...], gram, num_imp
        ).astype(shift_ref.dtype)


def _apply_kernel(x_ref, scale_ref, shift_ref, o_ref):
    # x_ref: (1, C, thw); scale_ref/shift_ref: (1, C, 1)
    o_ref[0] = (scale_ref[0] * x_ref[0].astype(jnp.float32)
                + shift_ref[0]).astype(o_ref.dtype)


def implicit_shift_c(x, params, *, num_imp=4, force_two_pass=False,
                     hw_tile_override=None):
    """x: (B, C, H, W) (NCHW, like the PyTorch module)."""
    B, C, H, W = x.shape
    HW = H * W
    x3 = x.reshape(B, C, HW)
    xb = x.dtype.itemsize

    # Host-side parameter layout (tiny, one-time):
    w_m = params["wm"].reshape(num_imp, C, C)
    w_a = params["wa"].reshape(num_imp, C, C)
    b_m = params["bm"].reshape(num_imp, 1)
    b_a = params["ba"].reshape(num_imp, 1)
    imp_m = params["imp_mul"][0]                      # (C, num_imp), untransposed
    imp_a = params["imp_add"][0]                      # (C, num_imp)

    budget = _vmem_budget_bytes()
    inv_hw = 1.0 / HW
    # Weights (double-buffered) + finalize temporaries + gram + tiny params.
    w_fixed = 6 * num_imp * C * C * _BF + C * C * _BF + 8 * num_imp * C * _BF

    # ---- Fused single-pass path when the per-batch slab fits VMEM ----
    slab_x = C * HW * xb
    slab_f32 = C * HW * _BF
    fused_need = 4 * slab_x + 2 * slab_f32 + w_fixed + (1 << 20)
    if (not force_two_pass) and fused_need <= budget:
        kernel = functools.partial(_fused_kernel, inv_hw=inv_hw, num_imp=num_imp)
        out = pl.pallas_call(
            kernel,
            out_shape=jax.ShapeDtypeStruct((B, C, HW), x.dtype),
            grid_spec=pltpu.PrefetchScalarGridSpec(
                num_scalar_prefetch=0,
                grid=(B,),
                in_specs=[
                    pl.BlockSpec((1, C, HW), lambda b: (b, 0, 0)),
                    pl.BlockSpec((num_imp, C, C), lambda b: (0, 0, 0)),
                    pl.BlockSpec((num_imp, 1), lambda b: (0, 0)),
                    pl.BlockSpec((C, num_imp), lambda b: (0, 0)),
                    pl.BlockSpec((num_imp, C, C), lambda b: (0, 0, 0)),
                    pl.BlockSpec((num_imp, 1), lambda b: (0, 0)),
                    pl.BlockSpec((C, num_imp), lambda b: (0, 0)),
                ],
                out_specs=pl.BlockSpec((1, C, HW), lambda b: (b, 0, 0)),
            ),
            compiler_params=pltpu.CompilerParams(
                dimension_semantics=("parallel",),
                vmem_limit_bytes=budget),
            cost_estimate=pl.CostEstimate(
                flops=2 * B * C * C * HW + 2 * B * C * HW,
                transcendentals=0,
                bytes_accessed=2 * B * C * HW * xb + 2 * num_imp * C * C * _BF),
        )(x3, w_m, b_m, imp_m, w_a, b_a, imp_a)
        return out.reshape(B, C, H, W)

    # ---- Two-pass fallback ----
    tile_target = 2 * 1024 * 1024                     # ~2 MiB per (1, C, thw) DMA
    elem = max(xb, _BF)

    p1_fixed = w_fixed + 4 * num_imp * C * C * _BF
    p1_max = max(2 * 128 * C * elem, (budget - p1_fixed) // 5)
    thw1 = hw_tile_override or _pick_hw_tile(
        HW, C, target_bytes=tile_target, max_bytes=p1_max, elem_bytes=elem)
    n_t1 = pl.cdiv(HW, thw1)

    p2_max = max(2 * 128 * C * elem, budget // 6)     # pass 2 only needs streaming bufs
    thw2 = hw_tile_override or _pick_hw_tile(
        HW, C, target_bytes=2 * tile_target, max_bytes=p2_max, elem_bytes=elem)
    n_t2 = pl.cdiv(HW, thw2)

    # Pass 1: gram accumulation + (B, C, 1) coefficient columns.
    kernel1 = functools.partial(_gram_coef_kernel, inv_hw=inv_hw, hw=HW,
                                thw=thw1, num_imp=num_imp)
    scale_col, shift_col = pl.pallas_call(
        kernel1,
        out_shape=(jax.ShapeDtypeStruct((B, C, 1), jnp.float32),
                   jax.ShapeDtypeStruct((B, C, 1), jnp.float32)),
        grid_spec=pltpu.PrefetchScalarGridSpec(
            num_scalar_prefetch=0,
            grid=(B, n_t1),
            in_specs=[
                pl.BlockSpec((1, C, thw1), lambda b, t: (b, 0, t)),
                pl.BlockSpec((num_imp, C, C), lambda b, t: (0, 0, 0)),
                pl.BlockSpec((num_imp, 1), lambda b, t: (0, 0)),
                pl.BlockSpec((C, num_imp), lambda b, t: (0, 0)),
                pl.BlockSpec((num_imp, C, C), lambda b, t: (0, 0, 0)),
                pl.BlockSpec((num_imp, 1), lambda b, t: (0, 0)),
                pl.BlockSpec((C, num_imp), lambda b, t: (0, 0)),
            ],
            out_specs=[
                pl.BlockSpec((1, C, 1), lambda b, t: (b, 0, 0)),
                pl.BlockSpec((1, C, 1), lambda b, t: (b, 0, 0)),
            ],
            scratch_shapes=[pltpu.VMEM((C, C), jnp.float32)],
        ),
        compiler_params=pltpu.CompilerParams(
            dimension_semantics=("parallel", "arbitrary"),
            vmem_limit_bytes=budget),
        cost_estimate=pl.CostEstimate(
            flops=2 * B * C * C * HW,
            transcendentals=0,
            bytes_accessed=B * C * HW * xb + 2 * num_imp * C * C * _BF + 2 * B * C * _BF),
    )(x3, w_m, b_m, imp_m, w_a, b_a, imp_a)

    # Pass 2: streaming scale/shift application with its own (larger) tile.
    out = pl.pallas_call(
        _apply_kernel,
        out_shape=jax.ShapeDtypeStruct((B, C, HW), x.dtype),
        grid_spec=pltpu.PrefetchScalarGridSpec(
            num_scalar_prefetch=0,
            grid=(B, n_t2),
            in_specs=[
                pl.BlockSpec((1, C, thw2), lambda b, t: (b, 0, t)),
                pl.BlockSpec((1, C, 1), lambda b, t: (b, 0, 0)),
                pl.BlockSpec((1, C, 1), lambda b, t: (b, 0, 0)),
            ],
            out_specs=pl.BlockSpec((1, C, thw2), lambda b, t: (b, 0, t)),
        ),
        compiler_params=pltpu.CompilerParams(
            dimension_semantics=("parallel", "parallel"),
            vmem_limit_bytes=budget),
        cost_estimate=pl.CostEstimate(
            flops=2 * B * C * HW,
            transcendentals=0,
            bytes_accessed=2 * B * C * HW * xb + 2 * B * C * _BF),
    )(x3, scale_col, shift_col)

    return out.reshape(B, C, H, W)


def reference(x, params, *, num_imp=4):
    """Pure-JAX reference mirroring the PyTorch forward."""
    B, C, H, W = x.shape
    HW = H * W
    xf = x.reshape(B, C, HW)
    gram = jnp.einsum('bci,bdi->bcd', xf, xf) / HW            # (B, C, C)
    gram_flat = gram.reshape(B, C * C)

    def branch(w, b, imp):
        p = gram_flat @ w.T + b                               # (B, num_imp)
        p = p[..., None]                                      # (B, num_imp, 1)
        p = p / (p.sum(axis=1, keepdims=True) + 1e-12)
        return jnp.matmul(imp, p)                             # (B, C, 1)

    scale = branch(params["wm"], params["bm"], params["imp_mul"])
    shift = branch(params["wa"], params["ba"], params["imp_add"])
    return scale[..., None] * x + shift[..., None]


def make_params(key, channel, num_imp):
    k1, k2, k3, k4, k5, k6 = jax.random.split(key, 6)
    lim = 1.0 / np.sqrt(channel * channel)
    return {
        # ImplicitShift_C re-inits: imp_add ~ N(0, 0.02), imp_mul ~ N(1, 0.02)
        "imp_add": 0.02 * jax.random.normal(k1, (1, channel, num_imp), jnp.float32),
        "imp_mul": 1.0 + 0.02 * jax.random.normal(k2, (1, channel, num_imp), jnp.float32),
        # dynamic_layer (Linear(channel*channel -> num_imp)); biases positive so
        # the normalization denominator is well-behaved for the test.
        "wm": jax.random.uniform(k3, (num_imp, channel * channel), jnp.float32,
                                 minval=-lim, maxval=lim),
        "bm": jax.random.uniform(k4, (num_imp,), jnp.float32, minval=0.1, maxval=0.5),
        "wa": jax.random.uniform(k5, (num_imp, channel * channel), jnp.float32,
                                 minval=-lim, maxval=lim),
        "ba": jax.random.uniform(k6, (num_imp,), jnp.float32, minval=0.1, maxval=0.5),
    }


if __name__ == "__main__":
    NUM_IMP = 4

    # --- Test 1: fused single-pass path (per-batch slab fits VMEM) ---
    B, C, H, W = 2, 4, 16, 16
    kx, kp = jax.random.split(jax.random.PRNGKey(0))
    x = jax.random.normal(kx, (B, C, H, W), jnp.float32)
    params = make_params(kp, C, NUM_IMP)
    out = jax.block_until_ready(implicit_shift_c(x, params, num_imp=NUM_IMP))
    assert out.shape == x.shape
    ref = reference(x, params, num_imp=NUM_IMP)
    np.testing.assert_allclose(np.asarray(out), np.asarray(ref), rtol=2e-3, atol=2e-4)

    # --- Test 2: two-pass fallback with a non-dividing HW tile (exercises the
    #     pl.when-gated remainder mask in pass 1 and the masked edge output
    #     block in pass 2). HW = 252, tile 128 -> last tile covers 124 lanes. ---
    B2, C2, H2, W2 = 2, 4, 18, 14
    kx2, kp2 = jax.random.split(jax.random.PRNGKey(1))
    x2 = jax.random.normal(kx2, (B2, C2, H2, W2), jnp.float32)
    params2 = make_params(kp2, C2, NUM_IMP)
    out2 = jax.block_until_ready(
        implicit_shift_c(x2, params2, num_imp=NUM_IMP,
                         force_two_pass=True, hw_tile_override=128))
    ref2 = reference(x2, params2, num_imp=NUM_IMP)
    np.testing.assert_allclose(np.asarray(out2), np.asarray(ref2), rtol=2e-3, atol=2e-4)

    print("KERNEL_OK")
</pallas_src>

<mosaic_0001>
module attributes {stable_mosaic.version = 11 : i64} {
  func.func @_fused_kernel(%arg0: i32, %arg1: memref<1x4x256xf32, #tpu.memory_space<vmem>>, %arg2: memref<4x4x4xf32, #tpu.memory_space<vmem>>, %arg3: memref<4x1xf32, #tpu.memory_space<vmem>>, %arg4: memref<4x4xf32, #tpu.memory_space<vmem>>, %arg5: memref<4x4x4xf32, #tpu.memory_space<vmem>>, %arg6: memref<4x1xf32, #tpu.memory_space<vmem>>, %arg7: memref<4x4xf32, #tpu.memory_space<vmem>>, %arg8: memref<1x4x256xf32, #tpu.memory_space<vmem>>) attributes {dimension_semantics = [#tpu.dimension_semantics<parallel>], iteration_bounds = array<i64: 2>, scalar_prefetch = 0 : i64, scratch_operands = 0 : i64, tpu.core_type = #tpu.core_type<tc>, window_params = [{transform_indices = @transform_0, window_bounds = array<i64: 1, 4, 256>}, {pipeline_mode = #tpu.pipeline_mode<synchronous>, transform_indices = @transform_1, window_bounds = array<i64: 4, 4, 4>}, {pipeline_mode = #tpu.pipeline_mode<synchronous>, transform_indices = @transform_2, window_bounds = array<i64: 4, 1>}, {pipeline_mode = #tpu.pipeline_mode<synchronous>, transform_indices = @transform_3, window_bounds = array<i64: 4, 4>}, {pipeline_mode = #tpu.pipeline_mode<synchronous>, transform_indices = @transform_4, window_bounds = array<i64: 4, 4, 4>}, {pipeline_mode = #tpu.pipeline_mode<synchronous>, transform_indices = @transform_5, window_bounds = array<i64: 4, 1>}, {pipeline_mode = #tpu.pipeline_mode<synchronous>, transform_indices = @transform_6, window_bounds = array<i64: 4, 4>}, {transform_indices = @transform_7, window_bounds = array<i64: 1, 4, 256>}]} {
    %c0 = arith.constant 0 : index
    %c0_0 = arith.constant 0 : index
    %c0_1 = arith.constant 0 : index
    %0 = vector.load %arg1[%c0, %c0_0, %c0_1] : memref<1x4x256xf32, #tpu.memory_space<vmem>>, vector<1x4x256xf32>
    %1 = vector.shape_cast %0 : vector<1x4x256xf32> to vector<4x256xf32>
    %cst = arith.constant dense<0.000000e+00> : vector<4x4xf32>
    %2 = tpu.matmul %1, %1, %cst {dimension_numbers = #tpu.dot_dimension_numbers<[1], [1], [0], [0], [0, 0, 1, 0], [], []>} : vector<4x256xf32>, vector<4x256xf32>, vector<4x4xf32> -> vector<4x4xf32>
    %cst_2 = arith.constant 3.906250e-03 : f32
    %3 = vector.broadcast %cst_2 : f32 to vector<4x4xf32>
    %4 = arith.mulf %2, %3 : vector<4x4xf32>
    %c0_3 = arith.constant 0 : index
    %c0_4 = arith.constant 0 : index
    %c0_5 = arith.constant 0 : index
    %5 = vector.load %arg2[%c0_3, %c0_4, %c0_5] : memref<4x4x4xf32, #tpu.memory_space<vmem>>, vector<4x4x4xf32>
    %c0_6 = arith.constant 0 : index
    %c0_7 = arith.constant 0 : index
    %6 = vector.load %arg3[%c0_6, %c0_7] : memref<4x1xf32, #tpu.memory_space<vmem>>, vector<4x1xf32>
    %c0_8 = arith.constant 0 : index
    %c0_9 = arith.constant 0 : index
    %7 = vector.load %arg4[%c0_8, %c0_9] : memref<4x4xf32, #tpu.memory_space<vmem>>, vector<4x4xf32>
    %8 = vector.shape_cast %4 : vector<4x4xf32> to vector<1x4x4xf32>
    %9 = vector.broadcast %8 : vector<1x4x4xf32> to vector<4x4x4xf32>
    %10 = arith.mulf %5, %9 : vector<4x4x4xf32>
    %cst_10 = arith.constant dense<0.000000e+00> : vector<4x4xf32>
    %11 = vector.multi_reduction <add>, %10, %cst_10 [2] : vector<4x4x4xf32> to vector<4x4xf32>
    %cst_11 = arith.constant dense<0.000000e+00> : vector<4xf32>
    %12 = vector.multi_reduction <add>, %11, %cst_11 [1] : vector<4x4xf32> to vector<4xf32>
    %13 = vector.shape_cast %12 : vector<4xf32> to vector<4x1xf32>
    %14 = arith.addf %13, %6 : vector<4x1xf32>
    %cst_12 = arith.constant dense<0.000000e+00> : vector<1xf32>
    %15 = vector.multi_reduction <add>, %14, %cst_12 [0] : vector<4x1xf32> to vector<1xf32>
    %16 = vector.shape_cast %15 : vector<1xf32> to vector<1x1xf32>
    %cst_13 = arith.constant 9.99999996E-13 : f32
    %17 = vector.broadcast %cst_13 : f32 to vector<1x1xf32>
    %18 = arith.addf %16, %17 : vector<1x1xf32>
    %19 = vector.broadcast %18 : vector<1x1xf32> to vector<4x1xf32>
    %20 = arith.divf %14, %19 : vector<4x1xf32>
    %21 = tpu.iota {dimensions = array<i32: 0>} : vector<4x4xi32>
    %22 = tpu.iota {dimensions = array<i32: 1>} : vector<4x4xi32>
    %23 = arith.cmpi eq, %21, %22 : vector<4x4xi32>
    %cst_14 = arith.constant 0.000000e+00 : f32
    %24 = vector.shape_cast %20 : vector<4x1xf32> to vector<4x1xf32>
    %25 = vector.broadcast %24 : vector<4x1xf32> to vector<4x4xf32>
    %26 = vector.broadcast %cst_14 : f32 to vector<4x4xf32>
    %27 = arith.select %23, %25, %26 : vector<4x4xi1>, vector<4x4xf32>
    %cst_15 = arith.constant dense<0.000000e+00> : vector<4xf32>
    %28 = vector.multi_reduction <add>, %27, %cst_15 [0] : vector<4x4xf32> to vector<4xf32>
    %29 = vector.shape_cast %28 : vector<4xf32> to vector<1x4xf32>
    %30 = vector.broadcast %29 : vector<1x4xf32> to vector<4x4xf32>
    %31 = arith.mulf %7, %30 : vector<4x4xf32>
    %cst_16 = arith.constant dense<0.000000e+00> : vector<4xf32>
    %32 = vector.multi_reduction <add>, %31, %cst_16 [1] : vector<4x4xf32> to vector<4xf32>
    %33 = vector.shape_cast %32 : vector<4xf32> to vector<4x1xf32>
    %c0_17 = arith.constant 0 : index
    %c0_18 = arith.constant 0 : index
    %c0_19 = arith.constant 0 : index
    %34 = vector.load %arg5[%c0_17, %c0_18, %c0_19] : memref<4x4x4xf32, #tpu.memory_space<vmem>>, vector<4x4x4xf32>
    %c0_20 = arith.constant 0 : index
    %c0_21 = arith.constant 0 : index
    %35 = vector.load %arg6[%c0_20, %c0_21] : memref<4x1xf32, #tpu.memory_space<vmem>>, vector<4x1xf32>
    %c0_22 = arith.constant 0 : index
    %c0_23 = arith.constant 0 : index
    %36 = vector.load %arg7[%c0_22, %c0_23] : memref<4x4xf32, #tpu.memory_space<vmem>>, vector<4x4xf32>
    %37 = vector.shape_cast %4 : vector<4x4xf32> to vector<1x4x4xf32>
    %38 = vector.broadcast %37 : vector<1x4x4xf32> to vector<4x4x4xf32>
    %39 = arith.mulf %34, %38 : vector<4x4x4xf32>
    %cst_24 = arith.constant dense<0.000000e+00> : vector<4x4xf32>
    %40 = vector.multi_reduction <add>, %39, %cst_24 [2] : vector<4x4x4xf32> to vector<4x4xf32>
    %cst_25 = arith.constant dense<0.000000e+00> : vector<4xf32>
    %41 = vector.multi_reduction <add>, %40, %cst_25 [1] : vector<4x4xf32> to vector<4xf32>
    %42 = vector.shape_cast %41 : vector<4xf32> to vector<4x1xf32>
    %43 = arith.addf %42, %35 : vector<4x1xf32>
    %cst_26 = arith.constant dense<0.000000e+00> : vector<1xf32>
    %44 = vector.multi_reduction <add>, %43, %cst_26 [0] : vector<4x1xf32> to vector<1xf32>
    %45 = vector.shape_cast %44 : vector<1xf32> to vector<1x1xf32>
    %cst_27 = arith.constant 9.99999996E-13 : f32
    %46 = vector.broadcast %cst_27 : f32 to vector<1x1xf32>
    %47 = arith.addf %45, %46 : vector<1x1xf32>
    %48 = vector.broadcast %47 : vector<1x1xf32> to vector<4x1xf32>
    %49 = arith.divf %43, %48 : vector<4x1xf32>
    %50 = tpu.iota {dimensions = array<i32: 0>} : vector<4x4xi32>
    %51 = tpu.iota {dimensions = array<i32: 1>} : vector<4x4xi32>
    %52 = arith.cmpi eq, %50, %51 : vector<4x4xi32>
    %cst_28 = arith.constant 0.000000e+00 : f32
    %53 = vector.shape_cast %49 : vector<4x1xf32> to vector<4x1xf32>
    %54 = vector.broadcast %53 : vector<4x1xf32> to vector<4x4xf32>
    %55 = vector.broadcast %cst_28 : f32 to vector<4x4xf32>
    %56 = arith.select %52, %54, %55 : vector<4x4xi1>, vector<4x4xf32>
    %cst_29 = arith.constant dense<0.000000e+00> : vector<4xf32>
    %57 = vector.multi_reduction <add>, %56, %cst_29 [0] : vector<4x4xf32> to vector<4xf32>
    %58 = vector.shape_cast %57 : vector<4xf32> to vector<1x4xf32>
    %59 = vector.broadcast %58 : vector<1x4xf32> to vector<4x4xf32>
    %60 = arith.mulf %36, %59 : vector<4x4xf32>
    %cst_30 = arith.constant dense<0.000000e+00> : vector<4xf32>
    %61 = vector.multi_reduction <add>, %60, %cst_30 [1] : vector<4x4xf32> to vector<4xf32>
    %62 = vector.shape_cast %61 : vector<4xf32> to vector<4x1xf32>
    %63 = vector.broadcast %33 : vector<4x1xf32> to vector<4x256xf32>
    %64 = arith.mulf %63, %1 : vector<4x256xf32>
    %65 = vector.broadcast %62 : vector<4x1xf32> to vector<4x256xf32>
    %66 = arith.addf %64, %65 : vector<4x256xf32>
    %c0_31 = arith.constant 0 : index
    %c0_32 = arith.constant 0 : index
    %c0_33 = arith.constant 0 : index
    %67 = vector.load %arg8[%c0_31, %c0_32, %c0_33] : memref<1x4x256xf32, #tpu.memory_space<vmem>>, vector<1x4x256xf32>
    %68 = vector.shape_cast %67 : vector<1x4x256xf32> to vector<4x256xf32>
    %69 = vector.shape_cast %66 : vector<4x256xf32> to vector<1x4x256xf32>
    tpu.vector_store %arg8[%c0_31, %c0_32, %c0_33], %69 {strides = array<i32>} : memref<1x4x256xf32, #tpu.memory_space<vmem>>, vector<1x4x256xf32>,
    return
  }
  func.func @transform_0(%arg0: i32) -> (i32, i32, i32) {
    %c0_i32 = arith.constant 0 : i32
    %c0_i32_0 = arith.constant 0 : i32
    %c0_i32_1 = arith.constant 0 : i32
    return %arg0, %c0_i32, %c0_i32_0 : i32, i32, i32
  }
  func.func @transform_1(%arg0: i32) -> (i32, i32, i32) {
    %c0_i32 = arith.constant 0 : i32
    %c0_i32_0 = arith.constant 0 : i32
    %c0_i32_1 = arith.constant 0 : i32
    %c0_i32_2 = arith.constant 0 : i32
    return %c0_i32, %c0_i32_0, %c0_i32_1 : i32, i32, i32
  }
  func.func @transform_2(%arg0: i32) -> (i32, i32) {
    %c0_i32 = arith.constant 0 : i32
    %c0_i32_0 = arith.constant 0 : i32
    %c0_i32_1 = arith.constant 0 : i32
    return %c0_i32, %c0_i32_0 : i32, i32
  }
  func.func @transform_3(%arg0: i32) -> (i32, i32) {
    %c0_i32 = arith.constant 0 : i32
    %c0_i32_0 = arith.constant 0 : i32
    %c0_i32_1 = arith.constant 0 : i32
    return %c0_i32, %c0_i32_0 : i32, i32
  }
  func.func @transform_4(%arg0: i32) -> (i32, i32, i32) {
    %c0_i32 = arith.constant 0 : i32
    %c0_i32_0 = arith.constant 0 : i32
    %c0_i32_1 = arith.constant 0 : i32
    %c0_i32_2 = arith.constant 0 : i32
    return %c0_i32, %c0_i32_0, %c0_i32_1 : i32, i32, i32
  }
  func.func @transform_5(%arg0: i32) -> (i32, i32) {
    %c0_i32 = arith.constant 0 : i32
    %c0_i32_0 = arith.constant 0 : i32
    %c0_i32_1 = arith.constant 0 : i32
    return %c0_i32, %c0_i32_0 : i32, i32
  }
  func.func @transform_6(%arg0: i32) -> (i32, i32) {
    %c0_i32 = arith.constant 0 : i32
    %c0_i32_0 = arith.constant 0 : i32
    %c0_i32_1 = arith.constant 0 : i32
    return %c0_i32, %c0_i32_0 : i32, i32
  }
  func.func @transform_7(%arg0: i32) -> (i32, i32, i32) {
    %c0_i32 = arith.constant 0 : i32
    %c0_i32_0 = arith.constant 0 : i32
    %c0_i32_1 = arith.constant 0 : i32
    return %arg0, %c0_i32, %c0_i32_0 : i32, i32, i32
  }
}

</mosaic_0001>

<bundles_post_ra>
// kernel: tpu_custom_call.1
= control target key start
LH: loop header
LB: loop body
LE: loop exit
PB: predicated region body
PF: predicated region fallthrough
CT: control target
= control target key end

     0   :  { %s1198_s0 = inlined_call_operand.hbm [shape: f32[2,4,256], index: 0, kind: input, shape index: {}]   ;;  %s1199_s1 = inlined_call_operand.hbm [shape: f32[4,4,4], index: 1, kind: input, shape index: {}]   ;;  %s1200_s2 = inlined_call_operand.vmem [shape: f32[4,1], index: 2, kind: input, shape index: {}]   ;;  %s1201_s3 = inlined_call_operand.hbm [shape: f32[4,4], index: 3, kind: input, shape index: {}]   ;;  %s1202_s4 = inlined_call_operand.vmem [shape: f32[4,4,4], index: 4, kind: input, shape index: {}]   ;;  %s1203_s5 = inlined_call_operand.vmem [shape: f32[4,1], index: 5, kind: input, shape index: {}]   ;;  %s1204_s6 = inlined_call_operand.vmem [shape: f32[4,4], index: 6, kind: input, shape index: {}]   ;;  %s1205_s7 = inlined_call_operand.hbm [shape: f32[2,4,256], index: 7, kind: output, shape index: {}]  }
   0x1   :  { %1210 = sst [smem:[#allocation12_spill]] %s1199_s1 }
   0x2   :  { %1211 = sst [smem:[#allocation13_spill]] %s1201_s3 }
   0x3   :  { %12 = vsyncpa [#allocation3], 0 }
   0x4   :  { %14 = vsyncpa [#allocation3 + $0x1], 0 }
   0x5   :  { %15 = vsyncpa [#allocation6], 0 }
   0x6   :  { %16 = vsyncpa [#allocation4], 0 }
   0x7   :  { %18 = vsyncpa [#allocation4 + $0x1], 0  ;;  %s968_s24 = smov 0   ;;  %s970_s25 = smov 0  }
   0x8   :  { %s972_s26 = smov 0   ;;  %s974_s27 = smov 0  }
   0x9 LB: > { %s989_s28 = sadd.s32 4294967295, %s919_s27   ;;  %s674_s29 = sadd.s32 4294967294, %s919_s27   ;;  %s919_s27 = sphi %s974_s27, %s1231_s27   ;;  %s915_s26 = sphi %s972_s26, %s1230_s26   ;;  %s911_s25 = sphi %s970_s25, %s1229_s25   ;;  %s907_s24 = sphi %s968_s24, %s1228_s24  }
   0xa   : > { %p44_p0 = scmp.ne.s32.totalorder %s911_s25, %s907_s24  ;;  %p1206_p1 = scmp.eq.s32.totalorder %s989_s28, 0 }
   0xb   : > { %p200_p3 = scmp.eq.s32.totalorder %s674_s29, 1  ;;  %p675_p5 = scmp.ge.s32.totalorder %s919_s27, 1 }
   0xc   : > { %p998_p4 = por %p1206_p1, %p44_p0  ;;  %p207_p7 = scmp.lt.s32.totalorder %s919_s27, 3 }
   0xd   : > { %p1003_p6 = por %p200_p3, %p44_p0  ;;  %s921_s10 = smov [#allocation5]  }
   0xe   : > { %s1212_s30 = scalar_select %p998_p4, 1, 0 }
   0xf   : > { %s1213_s8 = scalar_select %p1003_p6, 1, 0 }
  0x10   : > { %p1008_p8 = pnand %p675_p5, %p207_p7  ;;  %s219_s11 = sshll.u32 %s921_s10, 4  ;;  %s220_s11 = int_to_ptr.vmem [resolvable:$true] %s219_s11 }
  0x11   : > { %s922_s13 = smov [#allocation7]   ;;  %s782_s15 = scalar_lea.vmem %s220_s11, 256 }
  0x12   : > { %s1214_s9 = scalar_select %p1008_p8, 1, 0 }
  0x13   : > { %p706_p9 = pneg %p1008_p8  ;;  %s236_s14 = sshll.u32 %s922_s13, 4  ;;  %s237_s14 = int_to_ptr.vmem [resolvable:$true] %s236_s14 }
  0x14   : > { %p783_p13 = scmp.ne.s32.totalorder %s220_s11, %s782_s15  ;;  %p790_p5 = scmp.lt.s32.totalorder %s220_s11, %s220_s11 }
  0x15   : > { %p1017_p11 = pnand %p706_p9, %p1206_p1  ;;  %p791_p7 = scmp.lt.s32.totalorder %s782_s15, %s782_s15 }
  0x17   : > { %p773_p12 = pneg %p1017_p11  ;;  %p792_p10 = por %p791_p7, %p790_p5 }
  0x19   : > { %p785_p0 = pnand %p783_p13, %p773_p12 }
  0x1b   : > { %p786_p3 = pneg %p785_p0 }
  0x1d   : > { %p793_p9 = pnand %p792_p10, %p786_p3 }
  0x1f   : > { %796 = shalt.err (!%p793_p9)
}
  0x20   : > { %s923_s16 = smov 64   ;;  %s924_s17 = smov 4  }
  0x21   : > { %s1216_s1 = sld [smem:[#allocation12_spill]]  ;;  %s808_s20 = scalar_lea.vmem %s237_s14, 64 }
  0x22   : > { %p809_p1 = scmp.ne.s32.totalorder %s237_s14, %s808_s20  ;;  %p816_p2 = scmp.lt.s32.totalorder %s237_s14, %s237_s14 }
  0x23   : > { %p817_p6 = scmp.lt.s32.totalorder %s808_s20, %s808_s20 }
  0x24   : > { %p811_p13 = pnand %p809_p1, %p773_p12 }
  0x25   : > { %p818_p5 = por %p817_p6, %p816_p2 }
  0x26   : > { %p812_p0 = pneg %p811_p13 }
  0x27   : > { %709 = dma.hbm_to_vmem [thread:$0]  (!%p1017_p11), %s1216_s1, 256, %s220_s11, [#allocation6], %s923_s16, %s923_s16, %s924_s17  }
  0x28   : > { %p819_p10 = pnand %p818_p5, %p812_p0 }
  0x2a   : > { %822 = shalt.err (!%p819_p10)
}
  0x2b   : > { %s1217_s3 = sld [smem:[#allocation13_spill]]  ;;  %s1040_s23 = sadd.s32 1, %s919_s27  }
  0x2c   : > { %s31_s29 = sadd.s32 1, %s915_s26  ;;  %s28_s10 = ssub.s32 %s919_s27, %s1040_s23 }
  0x2d   : > { %p38_p1 = scmp.ne.s32.totalorder %s915_s26, %s911_s25  ;;  %p29_p2 = scmp.eq.s32.totalorder %s28_s10, 0 }
  0x2e   : > { %p39_p6 = scmp.eq.s32.totalorder %s919_s27, 0  ;;  %p1218_p12 = scmp.eq.s32.totalorder %s989_s28, 1 }
  0x2f   : > { %p723_p7 = scmp.lt.s32.totalorder %s919_s27, 2  ;;  %s256_s13 = sand.u32 1, %s915_s26  }
  0x30   : > { %p1050_p3 = por %p1218_p12, %p38_p1  ;;  %p40_p9 = por %p39_p6, %p38_p1 }
  0x31   : > { %712 = dma.hbm_to_vmem [thread:$0]  (!%p1017_p11), %s1217_s3, 64, %s237_s14, [#allocation6]  }
  0x32   : > { %s1219_s11 = scalar_select %p1050_p3, 1, 0 }
  0x33   : > { %s1056_s12 = scalar_select %p29_p2, %s915_s26, %s31_s29  }
  0x34   : > { %s679_s15 = sshll.u32 %s256_s13, 3  ;;  %s692_s14 = sshll.u32 %s919_s27, 7 }
  0x35   : > { %s1063_s18 = scalar_lea.hbm %s1198_s0, %s692_s14  ;;  %s260_s19 = scalar_lea.vmem [#allocation2], %s679_s15 }
  0x36   : > { %s268_s20 = sshll.u32 %s260_s19, 4  ;;  %p1065_p11 = pnand %p723_p7, %p40_p9  ;;  %s269_s20 = int_to_ptr.vmem [resolvable:$true] %s268_s20 }
  0x37   : > { %s257_s22 = scalar_lea.sflag [#allocation3], %s256_s13  ;;  %s823_s29 = scalar_lea.hbm %s1063_s18, 128 }
  0x38   : > { %p824_p13 = scmp.ne.s32.totalorder %s1063_s18, %s823_s29  ;;  %p825_p0 = pneg %p1065_p11 }
  0x39   : > { %s828_s16 = scalar_lea.hbm %s1198_s0, 256  ;;  %p829_p1 = scmp.lt.s32.totalorder %s1063_s18, %s1198_s0 }
  0x3a   : > { %p826_p5 = pnand %p825_p0, %p824_p13  ;;  %p830_p2 = scmp.lt.s32.totalorder %s828_s16, %s823_s29 }
  0x3c   : > { %p827_p10 = pneg %p826_p5  ;;  %p831_p6 = por %p830_p2, %p829_p1 }
  0x3e   : > { %p832_p12 = pnand %p831_p6, %p827_p10 }
  0x40   : > { %835 = shalt.err (!%p832_p12)
}
  0x41   : > { %s836_s19 = scalar_lea.vmem %s269_s20, 128  ;;  %s925_s13 = smov [#allocation2]  }
  0x42   : > { %p837_p7 = scmp.ne.s32.totalorder %s269_s20, %s836_s19  ;;  %s841_s1 = sshll.u32 %s925_s13, 4  ;;  %s842_s1 = int_to_ptr.vmem [resolvable:$false] %s841_s1 }
  0x43   : > { %s843_s3 = scalar_lea.vmem %s842_s1, 256  ;;  %p844_p13 = scmp.lt.s32.totalorder %s269_s20, %s842_s1 }
  0x44   : > { %p839_p9 = pnand %p837_p7, %p825_p0  ;;  %p845_p5 = scmp.lt.s32.totalorder %s843_s3, %s836_s19 }
  0x46   : > { %p840_p3 = pneg %p839_p9  ;;  %p846_p4 = por %p845_p5, %p844_p13 }
  0x48   : > { %p847_p8 = pnand %p846_p4, %p840_p3 }
  0x4a   : > { %850 = shalt.err (!%p847_p8)
}
  0x4b   : > { %716 = dma.hbm_to_vmem [thread:$0]  (!%p1065_p11), %s1063_s18, 128, %s269_s20, %s257_s22  }
  0x4c   : > { %p1221_p10 = scmp.ne.s32.totalorder %s1214_s9, 0 }
  0x4d   : > { %s1086_s29 = sand.u32 (!%p1221_p10), 1, %s911_s25   ;;  %p1222_p4 = scmp.ne.s32.totalorder (!%p1221_p10), %s1212_s30, 0 }
  0x4e   : > { %277 = sbr.rel (%p1221_p10) target bundleno = 914 (0x392), region = 48  ;;  %s683_s10 = sshll.u32 (!%p1221_p10), %s1086_s29, 3 }
  0x4f   : > { %s280_s1 = scalar_lea.sflag (!%p1221_p10), [#allocation3], %s1086_s29  ;;  %s283_s3 = scalar_lea.vmem (!%p1221_p10), [#allocation2], %s683_s10 }
  0x53   : > { %894 = dma.done.wait (%p1222_p4), %s280_s1, 128  }
  0x54   : > { %896 = vsyncadd (%p1222_p4), %s280_s1, 4294967168  ;;  %p1223_p8 = scmp.eq.s32.totalorder %s989_s28, 0 }
  0x56   : > { %898 = dma.done.wait (%p1223_p8), [#allocation6], 320   ;;  %p1224_p3 = pmov %p1223_p8 }
  0x57   : > { %v1100_v0 = vld [vmem:[%s283_s3] sm:$0xff]  ;;  %v399_v3 = vld [vmem:[#allocation5 + $0x8] sm:$0xf]  ;;  %v397_v4 = vld [vmem:[#allocation5] sm:$0xf]  ;;  %vm407_vm0 = vcmask 27648   ;;  %v424_v29 = vlaneseq }
  0x58   : > { %900 = vsyncadd (%p1224_p3), [#allocation6], 4294966976  ;;  %v1104_v1 = vcombine.high %v1100_v0, %v1100_v0  ;;  %v400_v7 = vld [vmem:[#allocation5 + $0xc] sm:$0xf]  ;;  %v398_v8 = vld [vmem:[#allocation5 + $0x4] sm:$0xf] }
  0x59   : > { %v485_v15 = vld [vmem:[%s1202_s4 + $0x4] sm:$0xf]  ;;  %v484_v16 = vld [vmem:[%s1202_s4] sm:$0xf]  ;;  %v487_v21 = vld [vmem:[%s1202_s4 + $0xc] sm:$0xf] }
  0x5a   : > { %356 = vmatprep.subr.mxu0 %v1104_v1  ;;  %390 = vmatprep.mubr.f32.mxu0 %v1104_v1  ;;  %v486_v22 = vld [vmem:[%s1202_s4 + $0x8] sm:$0xf]  ;;  %v1130_v30 = vand.u32 127, %v424_v29  ;;  %v1132_v31 = vshrl.u32 %v424_v29, 7  ;;  %vm442_vm1 = vcmask 1041409   ;;  %vm444_vm2 = vcmask 1042434  }
  0x5b   : > { %357 = vmatpush1.xpose.msra.mxu0 %v1100_v0  ;;  %vm446_vm3 = vcmask 1043459   ;;  %v926_v57 = vmov 0   ;;  %v401_v58 = vld [vmem:[%s1200_s2] sm:$0xf]  ;;  %vm453_vm4 = vcmask 3072   ;;  %s693_s30 = sshll.u32 %s989_s28, 7 }
  0x5c   : > { %v428_v34 = vsub.s32 %v1130_v30, %v1132_v31  ;;  %764 = vset.pattern.permute.xlu0 %v926_v57  ;;  %765 = vset.pattern.permute.xlu1 %v926_v57  ;;  %v488_v63 = vld [vmem:[%s1203_s5] sm:$0xf]  ;;  %vm466_vm5 = vcmp.eq.s32.totalorder %v1132_v31, %v1130_v30  ;;  %s321_s9 = scalar_lea.vmem [#allocation8], %s683_s10  ;;  %s583_s22 = scalar_lea.hbm %s1205_s7, %s693_s30 }
  0x5d   : > { %s585_s18 = sshll.u32 %s321_s9, 4  ;;  %s571_s14 = scalar_lea.sflag [#allocation4], %s1086_s29  ;;  %s586_s18 = int_to_ptr.vmem [resolvable:$true] %s585_s18 }
  0x5e   : > { %391 = vmatmul.mubr.f32.vlgmr.msra.gmra.mxu0 %v1100_v0  ;;  %s851_s16 = scalar_lea.vmem %s586_s18, 128  ;;  %p1225_p0 = scmp.ne.s32.totalorder %s1219_s11, 0 }
  0x5f   : > { %p852_p11 = scmp.ne.s32.totalorder %s586_s18, %s851_s16  ;;  %s927_s17 = smov [#allocation8]  }
  0x60   : > { %s855_s28 = sshll.u32 %s927_s17, 4  ;;  %s856_s28 = int_to_ptr.vmem [resolvable:$false] %s855_s28 }
  0x61   : > { %p853_p1 = pnand %p852_p11, %p1225_p0  ;;  %s857_s10 = scalar_lea.vmem %s856_s28, 256 }
  0x62   : > { %p858_p6 = scmp.lt.s32.totalorder %s586_s18, %s856_s28  ;;  %p859_p12 = scmp.lt.s32.totalorder %s857_s10, %s851_s16 }
  0x63   : > { %p854_p2 = pneg %p853_p1 }
  0x64   : > { %p860_p7 = por %p859_p12, %p858_p6 }
  0x66   : > { %p861_p9 = pnand %p860_p7, %p854_p2 }
 0x11e   : > { %v392_v2 = vpop.f32.mrf.mxu0 }
 0x11f   : > { %v396_v5 = vmul.f32 0.00390625, %v392_v2 }
 0x120   : > { %v394_v6 = vpop.f32.mrf.mxu0 }
 0x121   : > { %v405_v9 = vmul.f32 %v399_v3, %v396_v5  ;;  %v403_v10 = vmul.f32 %v397_v4, %v396_v5  ;;  %v406_v13 = vmul.f32 %v400_v7, %v396_v5  ;;  %v404_v14 = vmul.f32 %v398_v8, %v396_v5 }
 0x122   : > { %v491_v19 = vmul.f32 %v485_v15, %v396_v5  ;;  %v490_v20 = vmul.f32 %v484_v16, %v396_v5  ;;  %v493_v25 = vmul.f32 %v487_v21, %v396_v5  ;;  %v492_v26 = vmul.f32 %v486_v22, %v396_v5 }
 0x123   : > { %v414_v11 = vsel %vm407_vm0, %v405_v9, 0.0  ;;  %v408_v12 = vsel %vm407_vm0, %v403_v10, 0.0  ;;  %v417_v17 = vsel %vm407_vm0, %v406_v13, 0.0  ;;  %v411_v18 = vsel %vm407_vm0, %v404_v14, 0.0 }
 0x124   : > { %415 = vadd.xlane.f32.xlu1 %v414_v11  ;;  %409 = vadd.xlane.f32.xlu0 %v408_v12  ;;  %v497_v23 = vsel %vm407_vm0, %v491_v19, 0.0  ;;  %v494_v24 = vsel %vm407_vm0, %v490_v20, 0.0  ;;  %v503_v27 = vsel %vm407_vm0, %v493_v25, 0.0  ;;  %v500_v28 = vsel %vm407_vm0, %v492_v26, 0.0 }
 0x128   : > { %418 = vadd.xlane.f32.xlu1 %v417_v17  ;;  %412 = vadd.xlane.f32.xlu0 %v411_v18 }
 0x12c   : > { %498 = vadd.xlane.f32.xlu1 %v497_v23  ;;  %495 = vadd.xlane.f32.xlu0 %v494_v24 }
 0x130   : > { %504 = vadd.xlane.f32.xlu1 %v503_v27  ;;  %501 = vadd.xlane.f32.xlu0 %v500_v28 }
 0x1ad   : > { %v416_v32 = vpop.xlane.xlu1 %415  ;;  %v410_v33 = vpop.xlane.xlu0 %409 }
 0x1ae   : > { %v429_v37 = vrot.slane %v410_v33, %v428_v34  ;;  %v437_v39 = vrot.slane %v416_v32, %v428_v34 }
 0x1b1   : > { %v419_v35 = vpop.xlane.xlu1 %418  ;;  %v413_v36 = vpop.xlane.xlu0 %412 }
 0x1b2   : > { %v433_v38 = vrot.slane %v413_v36, %v428_v34  ;;  %v441_v40 = vrot.slane %v419_v35, %v428_v34 }
 0x1b4   : > { %v443_v41 = vsel %vm442_vm1, %v433_v38, %v429_v37  ;;  %v402_v37 = vld [vmem:[#allocation7] sm:$0xf] }
 0x1b5   : > { %v499_v42 = vpop.xlane.xlu1 %498  ;;  %v496_v43 = vpop.xlane.xlu0 %495  ;;  %v445_v44 = vsel %vm444_vm2, %v437_v39, %v443_v41 }
 0x1b6   : > { %v447_v45 = vsel %vm446_vm3, %v441_v40, %v445_v44  ;;  %v517_v46 = vrot.slane %v499_v42, %v428_v34  ;;  %v513_v47 = vrot.slane %v496_v43, %v428_v34  ;;  %v489_v42 = vld [vmem:[%s1204_s6] sm:$0xf] }
 0x1b7   : > { %v449_v48 = vsel %vm407_vm0, %v447_v45, 0.0 }
 0x1b8   : > { %450 = vadd.xlane.f32.xlu0 %v449_v48  ;;  %v526_v53 = vsel %vm442_vm1, %v517_v46, %v513_v47 }
 0x1b9   : > { %v505_v49 = vpop.xlane.xlu1 %504  ;;  %v502_v50 = vpop.xlane.xlu0 %501 }
 0x1ba   : > { %v525_v51 = vrot.slane %v505_v49, %v428_v34  ;;  %v521_v52 = vrot.slane %v502_v50, %v428_v34 }
 0x1bc   : > { %v527_v54 = vsel %vm444_vm2, %v521_v52, %v526_v53 }
 0x1bd   : > { %v528_v55 = vsel %vm446_vm3, %v525_v51, %v527_v54 }
 0x1be   : > { %v530_v56 = vsel %vm407_vm0, %v528_v55, 0.0 }
 0x1bf   : > { %531 = vadd.xlane.f32.xlu1 %v530_v56 }
 0x241   : > { %v451_v59 = vpop.xlane.xlu0 %450 }
 0x242   : > { %v452_v60 = vadd.f32 %v451_v59, %v401_v58 }
 0x244   : > { %v454_v61 = vsel %vm453_vm4, %v452_v60, 0.0 }
 0x245   : > { %v455_v62 = vrot.slane %v454_v61, 4 }
 0x247   : > { %v456_v2 = vadd.f32 %v455_v62, %v454_v61 }
 0x248   : > { %v532_v3 = vpop.xlane.xlu1 %531 }
 0x249   : > { %v457_v4 = vrot.slane %v456_v2, 2  ;;  %v533_v5 = vadd.f32 %v532_v3, %v488_v63 }
 0x24b   : > { %v458_v6 = vadd.f32 %v457_v4, %v456_v2  ;;  %v534_v7 = vsel %vm453_vm4, %v533_v5, 0.0 }
 0x24c   : > { %v535_v8 = vrot.slane %v534_v7, 4 }
 0x24d   : > { %v459_v9 = vrot.slane %v458_v6, 1 }
 0x24e   : > { %v536_v10 = vadd.f32 %v535_v8, %v534_v7 }
 0x24f   : > { %v460_v11 = vadd.f32 %v459_v9, %v458_v6 }
 0x250   : > { %v537_v12 = vrot.slane %v536_v10, 2 }
 0x251   : > { %v461_v13 = vadd.f32 1e-12, %v460_v11 }
 0x252   : > { %v538_v14 = vadd.f32 %v537_v12, %v536_v10 }
 0x253   : > { %767 = vrcp.f32 %v461_v13 }
 0x254   : > { %v539_v15 = vrot.slane %v538_v14, 1 }
 0x256   : > { %v540_v16 = vadd.f32 %v539_v15, %v538_v14 }
 0x258   : > { %v541_v17 = vadd.f32 1e-12, %v540_v16 }
 0x25a   : > { %769 = vrcp.f32 %v541_v17 }
 0x260   : > { %v768_v18 = vpop.eup %767 }
 0x261   : > { %v463_v19 = vmul.f32 %v768_v18, %v452_v60 }
 0x263   : > { %469 = vperm.xlu0 %764, %v463_v19  }
 0x267   : > { %v770_v20 = vpop.eup %769 }
 0x268   : > { %v543_v21 = vmul.f32 %v770_v20, %v533_v5 }
 0x26a   : > { %546 = vperm.xlu1 %765, %v543_v21  }
 0x2de   : > { %v470_v22 = vpop.permute.xlu0 %469 }
 0x2df   : > { %v472_v23 = vsel %vm466_vm5, %v470_v22, 0.0 }
 0x2e0   : > { %v473_v24 = vsel %vm407_vm0, %v472_v23, 0.0 }
 0x2e1   : > { %v474_v25 = vrot.slane %v473_v24, 4 }
 0x2e3   : > { %v475_v26 = vadd.f32 %v474_v25, %v473_v24 }
 0x2e5   : > { %v476_v27 = vrot.slane %v475_v26, 2  ;;  %v547_v28 = vpop.permute.xlu1 %546 }
 0x2e6   : > { %v549_v29 = vsel %vm466_vm5, %v547_v28, 0.0 }
 0x2e7   : > { %v477_v32 = vadd.f32 %v476_v27, %v475_v26  ;;  %v550_v33 = vsel %vm407_vm0, %v549_v29, 0.0 }
 0x2e8   : > { %v551_v34 = vrot.slane %v550_v33, 4 }
 0x2e9   : > { %v478_v35 = vrot.slane %v477_v32, 1 }
 0x2ea   : > { %v552_v36 = vadd.f32 %v551_v34, %v550_v33 }
 0x2eb   : > { %v479_v38 = vadd.f32 %v478_v35, %v477_v32 }
 0x2ec   : > { %v553_v39 = vrot.slane %v552_v36, 2 }
 0x2ed   : > { %v480_v30 = vmul.f32 %v479_v38, %v402_v37 }
 0x2ee   : > { %v554_v31 = vadd.f32 %v553_v39, %v552_v36 }
 0x2ef   : > { %v481_v40 = vsel %vm407_vm0, %v480_v30, 0.0 }
 0x2f0   : > { %482 = vadd.xlane.f32.xlu1 %v481_v40  ;;  %v555_v41 = vrot.slane %v554_v31, 1 }
 0x2f2   : > { %v556_v43 = vadd.f32 %v555_v41, %v554_v31 }
 0x2f4   : > { %v557_v44 = vmul.f32 %v556_v43, %v489_v42 }
 0x2f6   : > { %v558_v45 = vsel %vm407_vm0, %v557_v44, 0.0 }
 0x2f7   : > { %559 = vadd.xlane.f32.xlu0 %v558_v45 }
 0x379   : > { %v483_v46 = vpop.xlane.xlu1 %482 }
 0x37a   : > { %v561_v47 = vmul.f32 %v483_v46, %v1100_v0  ;;  %v562_v48 = vmul.f32 %v483_v46, %v1104_v1 }
 0x380   : > { %v560_v49 = vpop.xlane.xlu0 %559 }
 0x381   : > { %v563_v50 = vadd.f32 %v561_v47, %v560_v49  ;;  %v564_v51 = vadd.f32 %v562_v48, %v560_v49 }
 0x383   : > { %v567_v52 = vcombine.low %v563_v50, %v564_v51 }
 0x385   : > { %569 = vst [vmem:[%s321_s9] sm:$0xff] %v567_v52 }
 0x386   : > { %864 = shalt.err (!%p861_p9)
}
 0x387   : > { %s865_s15 = scalar_lea.hbm %s583_s22, 128  ;;  %s869_s13 = scalar_lea.hbm %s1205_s7, 256 }
 0x388   : > { %p866_p13 = scmp.ne.s32.totalorder %s583_s22, %s865_s15  ;;  %p870_p4 = scmp.lt.s32.totalorder %s583_s22, %s1205_s7 }
 0x389   : > { %p871_p8 = scmp.lt.s32.totalorder %s869_s13, %s865_s15 }
 0x38a   : > { %p867_p5 = pnand %p866_p13, %p1225_p0 }
 0x38b   : > { %p872_p3 = por %p871_p8, %p870_p4 }
 0x38c   : > { %p868_p10 = pneg %p867_p5 }
 0x38e   : > { %p873_p11 = pnand %p872_p3, %p868_p10 }
 0x390   : > { %876 = shalt.err (!%p873_p11)
}
 0x391   : > { %704 = dma.vmem_to_hbm [thread:$0]  (%p1225_p0), %s586_s18, 128, %s583_s22, %s571_s14  }
 0x392 PF: > { %s597_s30 = sand.u32 1, %s907_s24   ;;  %p1226_p1 = scmp.ne.s32.totalorder %s1213_s8, 0 }
 0x393   : > { %p1227_p2 = scmp.ge.s32.totalorder %s919_s27, 2  ;;  %s598_s9 = scalar_lea.sflag [#allocation4], %s597_s30 }
 0x395   : > { %p718_p6 = pnand %p1227_p2, %p1226_p1 }
 0x397   : > { %p719_p12 = pneg %p718_p6 }
 0x399   : > { %902 = dma.done.wait (%p719_p12), %s598_s9, 128  }
 0x39a   : > { %904 = vsyncadd (%p719_p12), %s598_s9, 4294967168  ;;  %p21_p7 = scmp.ge.s32.totalorder %s1040_s23, 4   ;;  %s1228_s24 = smov %s911_s25 }
 0x39b   : > { %s1229_s25 = smov %s915_s26  ;;  %s1230_s26 = smov %s1056_s12 }
 0x39c   : > { %s1231_s27 = smov %s1040_s23  ;;  %23 = sbr.rel (!%p21_p7) target bundleno = 9 (0x9), region = 101 }
 0x3a1   :  { %603 = vsyncpa [#allocation3], 1 }
 0x3a2   :  { %605 = vsyncpa [#allocation3 + $0x1], 1 }
 0x3a3   :  { %606 = vsyncpa [#allocation6], 1 }
 0x3a4   :  { %607 = vsyncpa [#allocation4], 1 }
 0x3a5   :  { %609 = vsyncpa [#allocation4 + $0x1], 1 }

</bundles_post_ra>
